<compile_context>
chip_gen: v7x
topology: tpu7x:2x2x1
jax: 0.10.0
libtpu: 0.0.40
codegen_flags: <defaults>
</compile_context>

<pallas_src>
import jax
import jax.numpy as jnp
import numpy as np
from jax.experimental import pallas as pl
from jax.experimental.pallas import tpu as pltpu


def _round_up(n, m):
    return ((n + m - 1) // m) * m


def _pad2(a, rows, cols):
    return jnp.pad(a, ((0, rows - a.shape[0]), (0, cols - a.shape[1])))


def sae_kernel(x_ref, w1_ref, b1_ref, w2_ref, b2_ref,
               w3_ref, b3_ref, w4_ref, b4_ref, out_ref):
    """Full 4-layer MLP forward for one (tb, Mpad) batch tile, all in VMEM."""
    cdt = w1_ref.dtype              # matmul operand dtype (f32 or bf16)
    x = x_ref[...]
    if x.dtype != cdt:
        x = x.astype(cdt)

    def dense(h, w_ref, b_ref):
        # MXU matmul with f32 accumulation; biases are kept in f32.
        return jnp.dot(h, w_ref[...], preferred_element_type=jnp.float32) + b_ref[...]

    h = jax.nn.sigmoid(dense(x, w1_ref, b1_ref))                 # (tb, 128)
    h = jax.nn.sigmoid(dense(h.astype(cdt), w2_ref, b2_ref))     # (tb, 128)
    h = jax.nn.sigmoid(dense(h.astype(cdt), w3_ref, b3_ref))     # (tb, 128)
    y = dense(h.astype(cdt), w4_ref, b4_ref)                     # (tb, Mpad)
    out_ref[...] = y.astype(out_ref.dtype)


def sae_forward(x, params, *, tb=256, use_bf16=False,
                vmem_budget_bytes=44 * 1024 * 1024):
    """x: (B, nb_movies).  params: dict of (in,out) weights and (1,out) biases."""
    B, M = x.shape
    H = 128                                   # padded hidden width (orig 20 / 10)
    Mpad = _round_up(max(M, 128), 128)        # lane-dense last dim
    out_dtype = x.dtype
    cdt = jnp.bfloat16 if use_bf16 else jnp.float32
    f32 = jnp.float32

    # Pad (and optionally narrow-cast) the parameters once in the wrapper.
    w1 = _pad2(params["w1"].astype(f32), Mpad, H).astype(cdt)
    b1 = _pad2(params["b1"].astype(f32), 1, H)
    w2 = _pad2(params["w2"].astype(f32), H, H).astype(cdt)
    b2 = _pad2(params["b2"].astype(f32), 1, H)
    w3 = _pad2(params["w3"].astype(f32), H, H).astype(cdt)
    b3 = _pad2(params["b3"].astype(f32), 1, H)
    w4 = _pad2(params["w4"].astype(f32), H, Mpad).astype(cdt)
    b4 = _pad2(params["b4"].astype(f32), 1, Mpad)

    in_bytes = 2 if use_bf16 else int(jnp.dtype(x.dtype).itemsize)
    out_bytes = int(jnp.dtype(out_dtype).itemsize)
    w_bytes = int(jnp.dtype(cdt).itemsize)
    # Resident weights/biases (default 2-deep buffering) + in/out tiles.
    weight_vmem = 2 * ((2 * Mpad * H + 2 * H * H) * w_bytes + (3 * H + Mpad) * 4)

    def tile_vmem(t):
        return 2 * t * Mpad * (in_bytes + out_bytes) + weight_vmem

    # Largest batch tile <= tb (multiple of 8) that fits the VMEM budget.
    tb = max(8, min(_round_up(tb, 8), _round_up(B, 8)))
    while tb > 8 and tile_vmem(tb) > vmem_budget_bytes:
        tb = max(8, _round_up(tb // 2, 8))

    Bpad = _round_up(B, tb)
    x_p = _pad2(x, Bpad, Mpad)
    if use_bf16:
        x_p = x_p.astype(jnp.bfloat16)

    grid = (Bpad // tb,)
    full = lambda arr: pl.BlockSpec(arr.shape, lambda i: (0, 0))

    flops = 2 * Bpad * (Mpad * H + H * H + H * H + H * Mpad)
    bytes_accessed = (Bpad * Mpad * (in_bytes + out_bytes)
                      + (2 * Mpad * H + 2 * H * H) * w_bytes + (3 * H + Mpad) * 4)
    vmem_limit = int(min(60 * 1024 * 1024,
                         max(32 * 1024 * 1024, tile_vmem(tb) + 8 * 1024 * 1024)))

    out_p = pl.pallas_call(
        sae_kernel,
        out_shape=jax.ShapeDtypeStruct((Bpad, Mpad), out_dtype),
        grid_spec=pltpu.PrefetchScalarGridSpec(
            num_scalar_prefetch=0,
            grid=grid,
            in_specs=[
                pl.BlockSpec((tb, Mpad), lambda i: (i, 0)),   # x batch tile
                full(w1), full(b1),
                full(w2), full(b2),
                full(w3), full(b3),
                full(w4), full(b4),
            ],
            out_specs=pl.BlockSpec((tb, Mpad), lambda i: (i, 0)),
        ),
        compiler_params=pltpu.CompilerParams(
            dimension_semantics=("parallel",),
            vmem_limit_bytes=vmem_limit),
        cost_estimate=pl.CostEstimate(
            flops=int(flops),
            transcendentals=int(3 * Bpad * H),
            bytes_accessed=int(bytes_accessed)),
    )(x_p, w1, b1, w2, b2, w3, b3, w4, b4)

    # Strip batch and movie padding.
    return out_p[:B, :M]


def init_params(key, nb_movies):
    """PyTorch nn.Linear default init: U(-1/sqrt(fan_in), +1/sqrt(fan_in)).
    Weights are stored already transposed to (in_features, out_features)."""
    dims = [(nb_movies, 20), (20, 10), (10, 20), (20, nb_movies)]
    params = {}
    for idx, (fan_in, fan_out) in enumerate(dims, start=1):
        key, kw, kb = jax.random.split(key, 3)
        bound = 1.0 / jnp.sqrt(jnp.float32(fan_in))
        params[f"w{idx}"] = jax.random.uniform(
            kw, (fan_in, fan_out), jnp.float32, -bound, bound)
        params[f"b{idx}"] = jax.random.uniform(
            kb, (1, fan_out), jnp.float32, -bound, bound)
    return params


def sae_reference(x, params):
    """Pure-JAX reference for correctness checking."""
    h = jax.nn.sigmoid(x @ params["w1"] + params["b1"])
    h = jax.nn.sigmoid(h @ params["w2"] + params["b2"])
    h = jax.nn.sigmoid(h @ params["w3"] + params["b3"])
    return h @ params["w4"] + params["b4"]


if __name__ == "__main__":
    key = jax.random.PRNGKey(0)
    nb_movies = 64      # small synthetic vocabulary of movies
    batch = 16

    key, kx, kp = jax.random.split(key, 3)
    # Synthetic ratings in [0, 5], like the SAE's user-rating rows.
    x = jax.random.uniform(kx, (batch, nb_movies), jnp.float32, 0.0, 5.0)
    params = init_params(kp, nb_movies)

    ref = sae_reference(x, params)

    # f32 path (default): should match the pure-JAX reference tightly.
    out = jax.block_until_ready(sae_forward(x, params))
    assert out.shape == (batch, nb_movies)
    assert np.allclose(np.asarray(out), np.asarray(ref), atol=1e-4, rtol=1e-4), \
        "f32 path mismatch vs. pure-JAX reference"

    # bf16 matmul-operand path (halves HBM traffic on this mem-bound kernel);
    # looser tolerance is the expected precision change, not a bug.
    out_bf16 = jax.block_until_ready(sae_forward(x, params, use_bf16=True))
    assert out_bf16.shape == (batch, nb_movies)
    assert np.allclose(np.asarray(out_bf16), np.asarray(ref), atol=1e-1, rtol=1e-1), \
        "bf16 path mismatch vs. pure-JAX reference"

    print("KERNEL_OK")
</pallas_src>

<mosaic_0001>
module attributes {stable_mosaic.version = 11 : i64} {
  func.func @sae_kernel(%arg0: i32, %arg1: memref<16x128xf32, #tpu.memory_space<vmem>>, %arg2: memref<128x128xf32, #tpu.memory_space<vmem>>, %arg3: memref<1x128xf32, #tpu.memory_space<vmem>>, %arg4: memref<128x128xf32, #tpu.memory_space<vmem>>, %arg5: memref<1x128xf32, #tpu.memory_space<vmem>>, %arg6: memref<128x128xf32, #tpu.memory_space<vmem>>, %arg7: memref<1x128xf32, #tpu.memory_space<vmem>>, %arg8: memref<128x128xf32, #tpu.memory_space<vmem>>, %arg9: memref<1x128xf32, #tpu.memory_space<vmem>>, %arg10: memref<16x128xf32, #tpu.memory_space<vmem>>) attributes {dimension_semantics = [#tpu.dimension_semantics<parallel>], iteration_bounds = array<i64: 1>, scalar_prefetch = 0 : i64, scratch_operands = 0 : i64, tpu.core_type = #tpu.core_type<tc>, window_params = [{transform_indices = @transform_0, window_bounds = array<i64: 16, 128>}, {pipeline_mode = #tpu.pipeline_mode<synchronous>, transform_indices = @transform_1, window_bounds = array<i64: 128, 128>}, {pipeline_mode = #tpu.pipeline_mode<synchronous>, transform_indices = @transform_2, window_bounds = array<i64: 1, 128>}, {pipeline_mode = #tpu.pipeline_mode<synchronous>, transform_indices = @transform_3, window_bounds = array<i64: 128, 128>}, {pipeline_mode = #tpu.pipeline_mode<synchronous>, transform_indices = @transform_4, window_bounds = array<i64: 1, 128>}, {pipeline_mode = #tpu.pipeline_mode<synchronous>, transform_indices = @transform_5, window_bounds = array<i64: 128, 128>}, {pipeline_mode = #tpu.pipeline_mode<synchronous>, transform_indices = @transform_6, window_bounds = array<i64: 1, 128>}, {pipeline_mode = #tpu.pipeline_mode<synchronous>, transform_indices = @transform_7, window_bounds = array<i64: 128, 128>}, {pipeline_mode = #tpu.pipeline_mode<synchronous>, transform_indices = @transform_8, window_bounds = array<i64: 1, 128>}, {transform_indices = @transform_9, window_bounds = array<i64: 16, 128>}]} {
    %c0 = arith.constant 0 : index
    %c0_0 = arith.constant 0 : index
    %0 = vector.load %arg1[%c0, %c0_0] : memref<16x128xf32, #tpu.memory_space<vmem>>, vector<16x128xf32>
    %c0_1 = arith.constant 0 : index
    %c0_2 = arith.constant 0 : index
    %1 = vector.load %arg2[%c0_1, %c0_2] : memref<128x128xf32, #tpu.memory_space<vmem>>, vector<128x128xf32>
    %cst = arith.constant dense<0.000000e+00> : vector<16x128xf32>
    %2 = tpu.matmul %0, %1, %cst {dimension_numbers = #tpu.dot_dimension_numbers<[1], [0], [0], [1], [0, 0, 1, 1], [], []>} : vector<16x128xf32>, vector<128x128xf32>, vector<16x128xf32> -> vector<16x128xf32>
    %c0_3 = arith.constant 0 : index
    %c0_4 = arith.constant 0 : index
    %3 = vector.load %arg3[%c0_3, %c0_4] : memref<1x128xf32, #tpu.memory_space<vmem>>, vector<1x128xf32>
    %4 = vector.broadcast %3 : vector<1x128xf32> to vector<16x128xf32>
    %5 = arith.addf %2, %4 : vector<16x128xf32>
    %6 = arith.negf %5 : vector<16x128xf32>
    %7 = math.exp %6 : vector<16x128xf32>
    %cst_5 = arith.constant 1.000000e+00 : f32
    %8 = vector.broadcast %cst_5 : f32 to vector<16x128xf32>
    %9 = arith.addf %8, %7 : vector<16x128xf32>
    %10 = arith.divf %8, %9 : vector<16x128xf32>
    %c0_6 = arith.constant 0 : index
    %c0_7 = arith.constant 0 : index
    %11 = vector.load %arg4[%c0_6, %c0_7] : memref<128x128xf32, #tpu.memory_space<vmem>>, vector<128x128xf32>
    %cst_8 = arith.constant dense<0.000000e+00> : vector<16x128xf32>
    %12 = tpu.matmul %10, %11, %cst_8 {dimension_numbers = #tpu.dot_dimension_numbers<[1], [0], [0], [1], [0, 0, 1, 1], [], []>} : vector<16x128xf32>, vector<128x128xf32>, vector<16x128xf32> -> vector<16x128xf32>
    %c0_9 = arith.constant 0 : index
    %c0_10 = arith.constant 0 : index
    %13 = vector.load %arg5[%c0_9, %c0_10] : memref<1x128xf32, #tpu.memory_space<vmem>>, vector<1x128xf32>
    %14 = vector.broadcast %13 : vector<1x128xf32> to vector<16x128xf32>
    %15 = arith.addf %12, %14 : vector<16x128xf32>
    %16 = arith.negf %15 : vector<16x128xf32>
    %17 = math.exp %16 : vector<16x128xf32>
    %cst_11 = arith.constant 1.000000e+00 : f32
    %18 = vector.broadcast %cst_11 : f32 to vector<16x128xf32>
    %19 = arith.addf %18, %17 : vector<16x128xf32>
    %20 = arith.divf %18, %19 : vector<16x128xf32>
    %c0_12 = arith.constant 0 : index
    %c0_13 = arith.constant 0 : index
    %21 = vector.load %arg6[%c0_12, %c0_13] : memref<128x128xf32, #tpu.memory_space<vmem>>, vector<128x128xf32>
    %cst_14 = arith.constant dense<0.000000e+00> : vector<16x128xf32>
    %22 = tpu.matmul %20, %21, %cst_14 {dimension_numbers = #tpu.dot_dimension_numbers<[1], [0], [0], [1], [0, 0, 1, 1], [], []>} : vector<16x128xf32>, vector<128x128xf32>, vector<16x128xf32> -> vector<16x128xf32>
    %c0_15 = arith.constant 0 : index
    %c0_16 = arith.constant 0 : index
    %23 = vector.load %arg7[%c0_15, %c0_16] : memref<1x128xf32, #tpu.memory_space<vmem>>, vector<1x128xf32>
    %24 = vector.broadcast %23 : vector<1x128xf32> to vector<16x128xf32>
    %25 = arith.addf %22, %24 : vector<16x128xf32>
    %26 = arith.negf %25 : vector<16x128xf32>
    %27 = math.exp %26 : vector<16x128xf32>
    %cst_17 = arith.constant 1.000000e+00 : f32
    %28 = vector.broadcast %cst_17 : f32 to vector<16x128xf32>
    %29 = arith.addf %28, %27 : vector<16x128xf32>
    %30 = arith.divf %28, %29 : vector<16x128xf32>
    %c0_18 = arith.constant 0 : index
    %c0_19 = arith.constant 0 : index
    %31 = vector.load %arg8[%c0_18, %c0_19] : memref<128x128xf32, #tpu.memory_space<vmem>>, vector<128x128xf32>
    %cst_20 = arith.constant dense<0.000000e+00> : vector<16x128xf32>
    %32 = tpu.matmul %30, %31, %cst_20 {dimension_numbers = #tpu.dot_dimension_numbers<[1], [0], [0], [1], [0, 0, 1, 1], [], []>} : vector<16x128xf32>, vector<128x128xf32>, vector<16x128xf32> -> vector<16x128xf32>
    %c0_21 = arith.constant 0 : index
    %c0_22 = arith.constant 0 : index
    %33 = vector.load %arg9[%c0_21, %c0_22] : memref<1x128xf32, #tpu.memory_space<vmem>>, vector<1x128xf32>
    %34 = vector.broadcast %33 : vector<1x128xf32> to vector<16x128xf32>
    %35 = arith.addf %32, %34 : vector<16x128xf32>
    %c0_23 = arith.constant 0 : index
    %c0_24 = arith.constant 0 : index
    %36 = vector.load %arg10[%c0_23, %c0_24] : memref<16x128xf32, #tpu.memory_space<vmem>>, vector<16x128xf32>
    tpu.vector_store %arg10[%c0_23, %c0_24], %35 {strides = array<i32>} : memref<16x128xf32, #tpu.memory_space<vmem>>, vector<16x128xf32>,
    return
  }
  func.func @transform_0(%arg0: i32) -> (i32, i32) {
    %c0_i32 = arith.constant 0 : i32
    %c0_i32_0 = arith.constant 0 : i32
    return %arg0, %c0_i32 : i32, i32
  }
  func.func @transform_1(%arg0: i32) -> (i32, i32) {
    %c0_i32 = arith.constant 0 : i32
    %c0_i32_0 = arith.constant 0 : i32
    %c0_i32_1 = arith.constant 0 : i32
    return %c0_i32, %c0_i32_0 : i32, i32
  }
  func.func @transform_2(%arg0: i32) -> (i32, i32) {
    %c0_i32 = arith.constant 0 : i32
    %c0_i32_0 = arith.constant 0 : i32
    %c0_i32_1 = arith.constant 0 : i32
    return %c0_i32, %c0_i32_0 : i32, i32
  }
  func.func @transform_3(%arg0: i32) -> (i32, i32) {
    %c0_i32 = arith.constant 0 : i32
    %c0_i32_0 = arith.constant 0 : i32
    %c0_i32_1 = arith.constant 0 : i32
    return %c0_i32, %c0_i32_0 : i32, i32
  }
  func.func @transform_4(%arg0: i32) -> (i32, i32) {
    %c0_i32 = arith.constant 0 : i32
    %c0_i32_0 = arith.constant 0 : i32
    %c0_i32_1 = arith.constant 0 : i32
    return %c0_i32, %c0_i32_0 : i32, i32
  }
  func.func @transform_5(%arg0: i32) -> (i32, i32) {
    %c0_i32 = arith.constant 0 : i32
    %c0_i32_0 = arith.constant 0 : i32
    %c0_i32_1 = arith.constant 0 : i32
    return %c0_i32, %c0_i32_0 : i32, i32
  }
  func.func @transform_6(%arg0: i32) -> (i32, i32) {
    %c0_i32 = arith.constant 0 : i32
    %c0_i32_0 = arith.constant 0 : i32
    %c0_i32_1 = arith.constant 0 : i32
    return %c0_i32, %c0_i32_0 : i32, i32
  }
  func.func @transform_7(%arg0: i32) -> (i32, i32) {
    %c0_i32 = arith.constant 0 : i32
    %c0_i32_0 = arith.constant 0 : i32
    %c0_i32_1 = arith.constant 0 : i32
    return %c0_i32, %c0_i32_0 : i32, i32
  }
  func.func @transform_8(%arg0: i32) -> (i32, i32) {
    %c0_i32 = arith.constant 0 : i32
    %c0_i32_0 = arith.constant 0 : i32
    %c0_i32_1 = arith.constant 0 : i32
    return %c0_i32, %c0_i32_0 : i32, i32
  }
  func.func @transform_9(%arg0: i32) -> (i32, i32) {
    %c0_i32 = arith.constant 0 : i32
    %c0_i32_0 = arith.constant 0 : i32
    return %arg0, %c0_i32 : i32, i32
  }
}

</mosaic_0001>

<bundles_post_ra>
// kernel: tpu_custom_call.1
= control target key start
LH: loop header
LB: loop body
LE: loop exit
PB: predicated region body
PF: predicated region fallthrough
CT: control target
= control target key end

     0   :  { %14 = vsyncpa [#allocation3], 0  ;;  %s1248_s0 = inlined_call_operand.hbm [shape: f32[16,128], index: 0, kind: input, shape index: {}]   ;;  %s1249_s1 = inlined_call_operand.hbm [shape: f32[128,128], index: 1, kind: input, shape index: {}]   ;;  %s1250_s2 = inlined_call_operand.vmem [shape: f32[1,128], index: 2, kind: input, shape index: {}]   ;;  %s1251_s3 = inlined_call_operand.hbm [shape: f32[128,128], index: 3, kind: input, shape index: {}]   ;;  %s1252_s4 = inlined_call_operand.vmem [shape: f32[1,128], index: 4, kind: input, shape index: {}]   ;;  %s1253_s5 = inlined_call_operand.hbm [shape: f32[128,128], index: 5, kind: input, shape index: {}]   ;;  %s1254_s6 = inlined_call_operand.vmem [shape: f32[1,128], index: 6, kind: input, shape index: {}]   ;;  %s1255_s7 = inlined_call_operand.hbm [shape: f32[128,128], index: 7, kind: input, shape index: {}]   ;;  %s1256_s8 = inlined_call_operand.vmem [shape: f32[1,128], index: 8, kind: input, shape index: {}]   ;;  %s1257_s9 = inlined_call_operand.hbm [shape: f32[16,128], index: 9, kind: output, shape index: {}]  }
   0x1   :  { %15 = vsyncpa [#allocation6], 0 }
   0x2   :  { %16 = vsyncpa [#allocation9], 0 }
   0x3   :  { %17 = vsyncpa [#allocation4], 0  ;;  %s1074_s30 = smov [#allocation5]   ;;  %s1075_s11 = smov [#allocation8]  }
   0x4   :  { %s35_s10 = sshll.u32 %s1074_s30, 4  ;;  %s63_s12 = sshll.u32 %s1075_s11, 4  ;;  %s36_s10 = int_to_ptr.vmem [resolvable:$true] %s35_s10  ;;  %s1132_s12 = int_to_ptr.vmem [resolvable:$true] %s63_s12 }
   0x5   :  { %s934_s15 = scalar_lea.hbm %s1249_s1, 2048 }
   0x6   :  { %p935_p0 = scmp.ne.s32.totalorder %s1249_s1, %s934_s15  ;;  %p938_p1 = scmp.lt.u32.totalorder %s934_s15, %s1249_s1 }
   0x8   :  { %p940_p2 = pnand %p938_p1, %p935_p0 }
   0xa   :  { %943 = shalt.err (!%p940_p2)
}
   0xb   :  { %s944_s20 = scalar_lea.vmem %s36_s10, 2048  ;;  %p949_p4 = scmp.lt.s32.totalorder %s36_s10, %s36_s10 }
   0xc   :  { %p945_p3 = scmp.ne.s32.totalorder %s36_s10, %s944_s20  ;;  %p950_p5 = scmp.lt.s32.totalorder %s944_s20, %s944_s20 }
   0xe   :  { %p951_p6 = por %p950_p5, %p949_p4 }
  0x10   :  { %p952_p7 = pnand %p951_p6, %p945_p3 }
  0x12   :  { %955 = shalt.err (!%p952_p7)
}
  0x13   :  { %s1076_s21 = smov 128   ;;  %s1077_s22 = smov 8  }
  0x14   :  { %41 = dma.hbm_to_vmem [thread:$0]  %s1249_s1, 2048, %s36_s10, [#allocation6], %s1076_s21, %s1076_s21, %s1077_s22  }
  0x15   :  { %s956_s27 = scalar_lea.hbm %s1253_s5, 2048 }
  0x16   :  { %p957_p8 = scmp.ne.s32.totalorder %s1253_s5, %s956_s27  ;;  %p960_p9 = scmp.lt.u32.totalorder %s956_s27, %s1253_s5 }
  0x18   :  { %p962_p10 = pnand %p960_p9, %p957_p8 }
  0x1a   :  { %965 = shalt.err (!%p962_p10)
}
  0x1b   :  { %s966_s13 = scalar_lea.vmem %s1132_s12, 2048  ;;  %p971_p12 = scmp.lt.s32.totalorder %s1132_s12, %s1132_s12 }
  0x1c   :  { %p967_p11 = scmp.ne.s32.totalorder %s1132_s12, %s966_s13  ;;  %p972_p13 = scmp.lt.s32.totalorder %s966_s13, %s966_s13 }
  0x1e   :  { %p973_p0 = por %p972_p13, %p971_p12 }
  0x20   :  { %p974_p1 = pnand %p973_p0, %p967_p11 }
  0x22   :  { %977 = shalt.err (!%p974_p1)
}
  0x23   :  { %69 = dma.hbm_to_vmem [thread:$0]  %s1253_s5, 2048, %s1132_s12, [#allocation9], %s1076_s21, %s1076_s21, %s1077_s22  }
  0x24   :  { %s1078_s14 = smov [#allocation2]   ;;  %s1079_s16 = smov [#allocation7]  }
  0x25   :  { %s23_s15 = sshll.u32 %s1078_s14, 4  ;;  %s49_s17 = sshll.u32 %s1079_s16, 4  ;;  %s24_s15 = int_to_ptr.vmem [resolvable:$true] %s23_s15  ;;  %s1169_s17 = int_to_ptr.vmem [resolvable:$true] %s49_s17 }
  0x26   :  { %s978_s20 = scalar_lea.hbm %s1248_s0, 256 }
  0x27   :  { %p979_p2 = scmp.ne.s32.totalorder %s1248_s0, %s978_s20  ;;  %p982_p3 = scmp.lt.u32.totalorder %s978_s20, %s1248_s0 }
  0x29   :  { %p984_p4 = pnand %p982_p3, %p979_p2 }
  0x2b   :  { %987 = shalt.err (!%p984_p4)
}
  0x2c   :  { %s988_s5 = scalar_lea.vmem %s24_s15, 256  ;;  %p993_p6 = scmp.lt.s32.totalorder %s24_s15, %s24_s15 }
  0x2d   :  { %p989_p5 = scmp.ne.s32.totalorder %s24_s15, %s988_s5  ;;  %p994_p7 = scmp.lt.s32.totalorder %s988_s5, %s988_s5 }
  0x2f   :  { %p995_p8 = por %p994_p7, %p993_p6 }
  0x31   :  { %p996_p9 = pnand %p995_p8, %p989_p5 }
  0x33   :  { %999 = shalt.err (!%p996_p9)
}
  0x34   :  { %29 = dma.hbm_to_vmem [thread:$0]  %s1248_s0, 256, %s24_s15, [#allocation3], %s1076_s21, %s1076_s21, %s1077_s22  }
  0x35   :  { %s1000_s30 = scalar_lea.hbm %s1251_s3, 2048 }
  0x36   :  { %p1001_p10 = scmp.ne.s32.totalorder %s1251_s3, %s1000_s30  ;;  %p1004_p11 = scmp.lt.u32.totalorder %s1000_s30, %s1251_s3 }
  0x38   :  { %p1006_p12 = pnand %p1004_p11, %p1001_p10 }
  0x3a   :  { %1009 = shalt.err (!%p1006_p12)
}
  0x3b   :  { %s1010_s14 = scalar_lea.vmem %s1169_s17, 2048  ;;  %p1015_p0 = scmp.lt.s32.totalorder %s1169_s17, %s1169_s17 }
  0x3c   :  { %p1011_p13 = scmp.ne.s32.totalorder %s1169_s17, %s1010_s14  ;;  %p1016_p1 = scmp.lt.s32.totalorder %s1010_s14, %s1010_s14 }
  0x3e   :  { %p1017_p2 = por %p1016_p1, %p1015_p0 }
  0x40   :  { %p1018_p3 = pnand %p1017_p2, %p1011_p13 }
  0x42   :  { %1021 = shalt.err (!%p1018_p3)
}
  0x43   :  { %55 = dma.hbm_to_vmem [thread:$0]  %s1251_s3, 2048, %s1169_s17, [#allocation6], %s1076_s21, %s1076_s21, %s1077_s22  }
  0x44   :  { %s1080_s16 = smov [#allocation10]   ;;  %s1022_s23 = scalar_lea.hbm %s1255_s7, 2048 }
  0x45   :  { %s77_s18 = sshll.u32 %s1080_s16, 4  ;;  %p1023_p4 = scmp.ne.s32.totalorder %s1255_s7, %s1022_s23  ;;  %s78_s18 = int_to_ptr.vmem [resolvable:$true] %s77_s18 }
  0x46   :  { %p1026_p5 = scmp.lt.u32.totalorder %s1022_s23, %s1255_s7 }
  0x48   :  { %p1028_p6 = pnand %p1026_p5, %p1023_p4 }
  0x4a   :  { %1031 = shalt.err (!%p1028_p6)
}
  0x4b   :  { %s1032_s12 = scalar_lea.vmem %s78_s18, 2048  ;;  %p1037_p8 = scmp.lt.s32.totalorder %s78_s18, %s78_s18 }
  0x4c   :  { %p1033_p7 = scmp.ne.s32.totalorder %s78_s18, %s1032_s12  ;;  %p1038_p9 = scmp.lt.s32.totalorder %s1032_s12, %s1032_s12 }
  0x4e   :  { %p1039_p10 = por %p1038_p9, %p1037_p8 }
  0x50   :  { %p1040_p11 = pnand %p1039_p10, %p1033_p7 }
  0x52   :  { %1043 = shalt.err (!%p1040_p11)
}
  0x53   :  { %83 = dma.hbm_to_vmem [thread:$0]  %s1255_s7, 2048, %s78_s18, [#allocation9], %s1076_s21, %s1076_s21, %s1077_s22  }
  0x54   :  { %1066 = dma.done.wait [#allocation3], 256  }
  0x55   :  { %1067 = vsyncadd [#allocation3], 4294967040 }
  0x56   :  { %1068 = dma.done.wait [#allocation6], 4096  }
  0x57   :  { %1069 = vsyncadd [#allocation6], 4294963200 }
  0x58   :  { %1070 = dma.done.wait [#allocation9], 4096  }
  0x59   :  { %1071 = vsyncadd [#allocation9], 4294963200  ;;  %v103_v0 = vld [vmem:[#allocation5] sm:$0xff]  ;;  %v104_v1 = vld [vmem:[#allocation5 + $0x8] sm:$0xff]  ;;  %s1081_s11 = smov [#allocation11]  }
  0x5a   :  { %v105_v2 = vld [vmem:[#allocation5 + $0x10] sm:$0xff]  ;;  %v774_v3 = vpack.c.bf16 %v104_v1, %v103_v0  ;;  %v106_v4 = vld [vmem:[#allocation5 + $0x18] sm:$0xff]  ;;  %v107_v6 = vld [vmem:[#allocation5 + $0x20] sm:$0xff]  ;;  %s538_s13 = sshll.u32 %s1081_s11, 4  ;;  %s539_s13 = int_to_ptr.vmem [resolvable:$true] %s538_s13 }
  0x5b   :  { %v778_v5 = vpack.c.bf16 %v106_v4, %v105_v2  ;;  %v108_v7 = vld [vmem:[#allocation5 + $0x28] sm:$0xff]  ;;  %v109_v9 = vld [vmem:[#allocation5 + $0x30] sm:$0xff]  ;;  %v110_v11 = vld [vmem:[#allocation5 + $0x38] sm:$0xff]  ;;  %s1044_s1 = scalar_lea.vmem %s539_s13, 256  ;;  %p1049_p13 = scmp.lt.s32.totalorder %s539_s13, %s539_s13 }
  0x5c   :  { %775 = vmatprep.subr.bf16.mxu0 %v774_v3  ;;  %v782_v8 = vpack.c.bf16 %v108_v7, %v107_v6  ;;  %v101_v10 = vld [vmem:[#allocation2] sm:$0xff]  ;;  %v213_v12 = vld [vmem:[#allocation7] sm:$0xff]  ;;  %v214_v13 = vld [vmem:[#allocation7 + $0x8] sm:$0xff]  ;;  %v786_v15 = vpack.c.bf16 %v110_v11, %v109_v9  ;;  %p1045_p12 = scmp.ne.s32.totalorder %s539_s13, %s1044_s1  ;;  %p1050_p0 = scmp.lt.s32.totalorder %s1044_s1, %s1044_s1 }
  0x5d   :  { %777 = vmatpush3.bf16.msra.mxu0 %v774_v3  ;;  %666 = vmatprep.mubr.f32.mxu0 %v101_v10  ;;  %v806_v14 = vpack.c.bf16 %v214_v13, %v213_v12  ;;  %v111_v16 = vld [vmem:[#allocation5 + $0x40] sm:$0xff]  ;;  %v112_v17 = vld [vmem:[#allocation5 + $0x48] sm:$0xff]  ;;  %v113_v19 = vld [vmem:[#allocation5 + $0x50] sm:$0xff] }
  0x5e   :  { %779 = vmatprep.subr.bf16.mxu0 %v778_v5  ;;  %v790_v18 = vpack.c.bf16 %v112_v17, %v111_v16  ;;  %v114_v20 = vld [vmem:[#allocation5 + $0x58] sm:$0xff]  ;;  %v115_v22 = vld [vmem:[#allocation5 + $0x60] sm:$0xff]  ;;  %v116_v23 = vld [vmem:[#allocation5 + $0x68] sm:$0xff]  ;;  %p1051_p1 = por %p1050_p0, %p1049_p13 }
  0x5f   :  { %807 = vmatprep.subr.bf16.mxu1 %v806_v14  ;;  %v794_v21 = vpack.c.bf16 %v114_v20, %v113_v19  ;;  %v798_v24 = vpack.c.bf16 %v116_v23, %v115_v22  ;;  %v117_v25 = vld [vmem:[#allocation5 + $0x70] sm:$0xff]  ;;  %v118_v26 = vld [vmem:[#allocation5 + $0x78] sm:$0xff]  ;;  %v217_v32 = vld [vmem:[#allocation7 + $0x20] sm:$0xff] }
  0x60   :  { %809 = vmatpush3.bf16.msra.mxu1 %v806_v14  ;;  %v802_v27 = vpack.c.bf16 %v118_v26, %v117_v25  ;;  %v102_v28 = vld [vmem:[#allocation2 + $0x8] sm:$0xff]  ;;  %v215_v29 = vld [vmem:[#allocation7 + $0x10] sm:$0xff]  ;;  %v218_v33 = vld [vmem:[#allocation7 + $0x28] sm:$0xff]  ;;  %p1052_p2 = pnand %p1051_p1, %p1045_p12 }
  0x61   :  { %781 = vmatpush3.bf16.msra.mxu0 %v778_v5  ;;  %v216_v30 = vld [vmem:[#allocation7 + $0x18] sm:$0xff]  ;;  %v814_v34 = vpack.c.bf16 %v218_v33, %v217_v32  ;;  %v219_v35 = vld [vmem:[#allocation7 + $0x30] sm:$0xff]  ;;  %v221_v38 = vld [vmem:[#allocation7 + $0x40] sm:$0xff] }
  0x62   :  { %783 = vmatprep.subr.bf16.mxu0 %v782_v8  ;;  %v810_v31 = vpack.c.bf16 %v216_v30, %v215_v29  ;;  %v220_v36 = vld [vmem:[#allocation7 + $0x38] sm:$0xff]  ;;  %v222_v39 = vld [vmem:[#allocation7 + $0x48] sm:$0xff]  ;;  %v223_v41 = vld [vmem:[#allocation7 + $0x50] sm:$0xff] }
  0x63   :  { %v818_v37 = vpack.c.bf16 %v220_v36, %v219_v35  ;;  %v822_v40 = vpack.c.bf16 %v222_v39, %v221_v38  ;;  %v224_v42 = vld [vmem:[#allocation7 + $0x58] sm:$0xff]  ;;  %v225_v44 = vld [vmem:[#allocation7 + $0x60] sm:$0xff]  ;;  %v226_v45 = vld [vmem:[#allocation7 + $0x68] sm:$0xff] }
  0x64   :  { %811 = vmatprep.subr.bf16.mxu1 %v810_v31  ;;  %v826_v43 = vpack.c.bf16 %v224_v42, %v223_v41  ;;  %v227_v46 = vld [vmem:[#allocation7 + $0x70] sm:$0xff]  ;;  %v830_v47 = vpack.c.bf16 %v226_v45, %v225_v44  ;;  %v228_v48 = vld [vmem:[#allocation7 + $0x78] sm:$0xff]  ;;  %v323_v50 = vld [vmem:[#allocation8] sm:$0xff] }
  0x65   :  { %785 = vmatpush3.bf16.msra.mxu0 %v782_v8  ;;  %813 = vmatpush3.bf16.msra.mxu1 %v810_v31  ;;  %v834_v49 = vpack.c.bf16 %v228_v48, %v227_v46  ;;  %v324_v51 = vld [vmem:[#allocation8 + $0x8] sm:$0xff]  ;;  %v552_v53 = vld [vmem:[%s1250_s2] ss:$0 sm:$0xff]  ;;  %v326_v3 = vld [vmem:[#allocation8 + $0x18] sm:$0xff] }
  0x66   :  { %787 = vmatprep.subr.bf16.mxu0 %v786_v15  ;;  %815 = vmatprep.subr.bf16.mxu1 %v814_v34  ;;  %v838_v52 = vpack.c.bf16 %v324_v51, %v323_v50  ;;  %v325_v2 = vld [vmem:[#allocation8 + $0x10] sm:$0xff]  ;;  %v327_v5 = vld [vmem:[#allocation8 + $0x20] sm:$0xff]  ;;  %v328_v6 = vld [vmem:[#allocation8 + $0x28] sm:$0xff] }
  0x67   :  { %v842_v4 = vpack.c.bf16 %v326_v3, %v325_v2  ;;  %v846_v7 = vpack.c.bf16 %v328_v6, %v327_v5  ;;  %v329_v8 = vld [vmem:[#allocation8 + $0x30] sm:$0xff]  ;;  %v330_v9 = vld [vmem:[#allocation8 + $0x38] sm:$0xff]  ;;  %v331_v11 = vld [vmem:[#allocation8 + $0x40] sm:$0xff] }
  0x68   :  { %v850_v10 = vpack.c.bf16 %v330_v9, %v329_v8  ;;  %v332_v12 = vld [vmem:[#allocation8 + $0x48] sm:$0xff]  ;;  %v333_v14 = vld [vmem:[#allocation8 + $0x50] sm:$0xff]  ;;  %v335_v17 = vld [vmem:[#allocation8 + $0x60] sm:$0xff] }
  0x69   :  { %789 = vmatpush3.bf16.msra.mxu0 %v786_v15  ;;  %817 = vmatpush3.bf16.msra.mxu1 %v814_v34  ;;  %v854_v13 = vpack.c.bf16 %v332_v12, %v331_v11  ;;  %v334_v15 = vld [vmem:[#allocation8 + $0x58] sm:$0xff]  ;;  %v337_v19 = vld [vmem:[#allocation8 + $0x70] sm:$0xff]  ;;  %v433_v23 = vld [vmem:[#allocation10] sm:$0xff] }
  0x6a   :  { %791 = vmatprep.subr.bf16.mxu0 %v790_v18  ;;  %819 = vmatprep.subr.bf16.mxu1 %v818_v37  ;;  %v858_v16 = vpack.c.bf16 %v334_v15, %v333_v14  ;;  %v555_v26 = vld [vmem:[%s1252_s4] ss:$0 sm:$0xff]  ;;  %v437_v42 = vld [vmem:[#allocation10 + $0x20] sm:$0xff]  ;;  %v440_v46 = vld [vmem:[#allocation10 + $0x38] sm:$0xff] }
  0x6b   :  { %v435_v39 = vld [vmem:[#allocation10 + $0x10] sm:$0xff]  ;;  %v441_v48 = vld [vmem:[#allocation10 + $0x40] sm:$0xff] }
  0x6c   :  { %v439_v45 = vld [vmem:[#allocation10 + $0x30] sm:$0xff] }
  0x6d   :  { %793 = vmatpush3.bf16.msra.mxu0 %v790_v18  ;;  %821 = vmatpush3.bf16.msra.mxu1 %v818_v37  ;;  %v336_v18 = vld [vmem:[#allocation8 + $0x68] sm:$0xff]  ;;  %v443_v51 = vld [vmem:[#allocation10 + $0x50] sm:$0xff] }
  0x6e   :  { %795 = vmatprep.subr.bf16.mxu0 %v794_v21  ;;  %823 = vmatprep.subr.bf16.mxu1 %v822_v40  ;;  %v862_v20 = vpack.c.bf16 %v336_v18, %v335_v17  ;;  %v561_v9 = vld [vmem:[%s1256_s8] ss:$0 sm:$0xff] }
  0x71   :  { %797 = vmatpush3.bf16.msra.mxu0 %v794_v21  ;;  %825 = vmatpush3.bf16.msra.mxu1 %v822_v40  ;;  %v338_v21 = vld [vmem:[#allocation8 + $0x78] sm:$0xff] }
  0x72   :  { %799 = vmatprep.subr.bf16.mxu0 %v798_v24  ;;  %827 = vmatprep.subr.bf16.mxu1 %v826_v43  ;;  %v866_v22 = vpack.c.bf16 %v338_v21, %v337_v19  ;;  %v436_v40 = vld [vmem:[#allocation10 + $0x18] sm:$0xff] }
  0x73   :  { %v874_v41 = vpack.c.bf16 %v436_v40, %v435_v39 }
  0x75   :  { %801 = vmatpush3.bf16.msra.mxu0 %v798_v24  ;;  %829 = vmatpush3.bf16.msra.mxu1 %v826_v43  ;;  %v434_v24 = vld [vmem:[#allocation10 + $0x8] sm:$0xff] }
  0x76   :  { %803 = vmatprep.subr.bf16.mxu0 %v802_v27  ;;  %831 = vmatprep.subr.bf16.mxu1 %v830_v47  ;;  %v870_v25 = vpack.c.bf16 %v434_v24, %v433_v23  ;;  %v438_v43 = vld [vmem:[#allocation10 + $0x28] sm:$0xff] }
  0x77   :  { %v878_v44 = vpack.c.bf16 %v438_v43, %v437_v42 }
  0x79   :  { %805 = vmatpush3.bf16.msra.mxu0 %v802_v27  ;;  %833 = vmatpush3.bf16.msra.mxu1 %v830_v47  ;;  %v882_v47 = vpack.c.bf16 %v440_v46, %v439_v45 }
  0x7a   :  { %835 = vmatprep.subr.bf16.mxu1 %v834_v49  ;;  %839 = vmatprep.subr.bf16.mxu0 %v838_v52 }
  0x7c   :  { %667 = vmatmul.mubr.f32.vlgmr.msra.gmra.mrb[0].mxu0 %v102_v28 }
  0x7d   :  { %837 = vmatpush3.bf16.msra.mxu1 %v834_v49  ;;  %841 = vmatpush3.bf16.msra.mxu0 %v838_v52  ;;  %v442_v49 = vld [vmem:[#allocation10 + $0x48] sm:$0xff]  ;;  %v444_v52 = vld [vmem:[#allocation10 + $0x58] sm:$0xff] }
  0x7e   :  { %843 = vmatprep.subr.bf16.mxu0 %v842_v4  ;;  %871 = vmatprep.subr.bf16.mxu1 %v870_v25  ;;  %v886_v50 = vpack.c.bf16 %v442_v49, %v441_v48 }
  0x81   :  { %845 = vmatpush3.bf16.msra.mxu0 %v842_v4 }
  0x82   :  { %847 = vmatprep.subr.bf16.mxu0 %v846_v7 }
  0x85   :  { %849 = vmatpush3.bf16.msra.mxu0 %v846_v7 }
  0x86   :  { %851 = vmatprep.subr.bf16.mxu0 %v850_v10 }
  0x89   :  { %853 = vmatpush3.bf16.msra.mxu0 %v850_v10 }
  0x8a   :  { %855 = vmatprep.subr.bf16.mxu0 %v854_v13 }
  0x8d   :  { %857 = vmatpush3.bf16.msra.mxu0 %v854_v13 }
  0x8e   :  { %859 = vmatprep.subr.bf16.mxu0 %v858_v16 }
  0x91   :  { %861 = vmatpush3.bf16.msra.mxu0 %v858_v16 }
  0x92   :  { %863 = vmatprep.subr.bf16.mxu0 %v862_v20 }
  0x95   :  { %865 = vmatpush3.bf16.msra.mxu0 %v862_v20 }
  0x96   :  { %867 = vmatprep.subr.bf16.mxu0 %v866_v22 }
  0x99   :  { %869 = vmatpush3.bf16.msra.mxu0 %v866_v22 }
 0x14f   :  { %v668_v54 = vpop.f32.mrb[0].mxu0 }
 0x150   :  { %v198_v55 = vadd.f32 %v668_v54, %v552_v53  ;;  %v192_v56 = vpop.f32.mrb[1].mxu0  ;;  %v445_v54 = vld [vmem:[#allocation10 + $0x60] sm:$0xff] }
 0x151   :  { %v193_v57 = vadd.f32 %v552_v53, %v192_v56  ;;  %v890_v53 = vpack.c.bf16 %v444_v52, %v443_v51  ;;  %v447_v56 = vld [vmem:[#allocation10 + $0x70] sm:$0xff] }
 0x152   :  { %v554_v58 = vmul.f32 -1.442695, %v198_v55  ;;  %v446_v55 = vld [vmem:[#allocation10 + $0x68] sm:$0xff] }
 0x153   :  { %v553_v59 = vmul.f32 -1.442695, %v193_v57  ;;  %v894_v57 = vpack.c.bf16 %v446_v55, %v445_v54 }
 0x154   :  { %910 = vpow2.f32 %v554_v58  ;;  %v448_v58 = vld [vmem:[#allocation10 + $0x78] sm:$0xff] }
 0x155   :  { %912 = vpow2.f32 %v553_v59  ;;  %v898_v59 = vpack.c.bf16 %v448_v58, %v447_v56 }
 0x15e   :  { %v911_v60 = vpop.eup %910 }
 0x15f   :  { %v913_v61 = vpop.eup %912  ;;  %v208_v62 = vadd.f32 1.0, %v911_v60  ;;  %v558_v60 = vld [vmem:[%s1254_s6] ss:$0 sm:$0xff] }
 0x160   :  { %v207_v63 = vadd.f32 1.0, %v913_v61 }
 0x162   :  { %914 = vrcp.f32 %v207_v63 }
 0x163   :  { %916 = vrcp.f32 %v208_v62 }
 0x16c   :  { %v915_v0 = vpop.eup %914 }
 0x16d   :  { %v917_v1 = vpop.eup %916  ;;  %701 = vmatprep.mubr.f32.mxu1 %v915_v0 }
 0x16e   :  { %702 = vmatmul.mubr.f32.vlgmr.msra.gmra.mrb[0].mxu1 %v917_v1 }
 0x16f   :  { %873 = vmatpush3.bf16.msra.mxu1 %v870_v25 }
 0x170   :  { %875 = vmatprep.subr.bf16.mxu1 %v874_v41 }
 0x173   :  { %877 = vmatpush3.bf16.msra.mxu1 %v874_v41 }
 0x174   :  { %879 = vmatprep.subr.bf16.mxu1 %v878_v44 }
 0x177   :  { %881 = vmatpush3.bf16.msra.mxu1 %v878_v44 }
 0x178   :  { %883 = vmatprep.subr.bf16.mxu1 %v882_v47 }
 0x17b   :  { %885 = vmatpush3.bf16.msra.mxu1 %v882_v47 }
 0x17c   :  { %887 = vmatprep.subr.bf16.mxu1 %v886_v50 }
 0x17f   :  { %889 = vmatpush3.bf16.msra.mxu1 %v886_v50 }
 0x180   :  { %891 = vmatprep.subr.bf16.mxu1 %v890_v53 }
 0x183   :  { %893 = vmatpush3.bf16.msra.mxu1 %v890_v53 }
 0x184   :  { %895 = vmatprep.subr.bf16.mxu1 %v894_v57 }
 0x187   :  { %897 = vmatpush3.bf16.msra.mxu1 %v894_v57 }
 0x188   :  { %899 = vmatprep.subr.bf16.mxu1 %v898_v59 }
 0x18b   :  { %901 = vmatpush3.bf16.msra.mxu1 %v898_v59 }
 0x241   :  { %v703_v27 = vpop.f32.mrb[0].mxu1 }
 0x242   :  { %v308_v28 = vadd.f32 %v703_v27, %v555_v26  ;;  %v302_v29 = vpop.f32.mrb[1].mxu1 }
 0x243   :  { %v303_v30 = vadd.f32 %v555_v26, %v302_v29 }
 0x244   :  { %v557_v31 = vmul.f32 -1.442695, %v308_v28 }
 0x245   :  { %v556_v32 = vmul.f32 -1.442695, %v303_v30 }
 0x246   :  { %918 = vpow2.f32 %v557_v31 }
 0x247   :  { %920 = vpow2.f32 %v556_v32 }
 0x250   :  { %v919_v33 = vpop.eup %918 }
 0x251   :  { %v921_v34 = vpop.eup %920  ;;  %v318_v35 = vadd.f32 1.0, %v919_v33 }
 0x252   :  { %v317_v36 = vadd.f32 1.0, %v921_v34 }
 0x254   :  { %922 = vrcp.f32 %v317_v36 }
 0x255   :  { %924 = vrcp.f32 %v318_v35 }
 0x25e   :  { %v923_v37 = vpop.eup %922 }
 0x25f   :  { %v925_v38 = vpop.eup %924  ;;  %736 = vmatprep.mubr.f32.mxu0 %v923_v37 }
 0x260   :  { %737 = vmatmul.mubr.f32.vlgmr.msra.gmra.mrb[2].mxu0 %v925_v38 }
 0x333   :  { %v738_v61 = vpop.f32.mrb[2].mxu0 }
 0x334   :  { %v418_v62 = vadd.f32 %v738_v61, %v558_v60  ;;  %v412_v63 = vpop.f32.mrb[3].mxu0 }
 0x335   :  { %v413_v0 = vadd.f32 %v558_v60, %v412_v63 }
 0x336   :  { %v560_v1 = vmul.f32 -1.442695, %v418_v62 }
 0x337   :  { %v559_v2 = vmul.f32 -1.442695, %v413_v0 }
 0x338   :  { %926 = vpow2.f32 %v560_v1 }
 0x339   :  { %928 = vpow2.f32 %v559_v2 }
 0x342   :  { %v927_v3 = vpop.eup %926 }
 0x343   :  { %v929_v4 = vpop.eup %928  ;;  %v428_v5 = vadd.f32 1.0, %v927_v3 }
 0x344   :  { %v427_v6 = vadd.f32 1.0, %v929_v4 }
 0x346   :  { %930 = vrcp.f32 %v427_v6 }
 0x347   :  { %932 = vrcp.f32 %v428_v5 }
 0x350   :  { %v931_v7 = vpop.eup %930 }
 0x351   :  { %v933_v8 = vpop.eup %932  ;;  %771 = vmatprep.mubr.f32.mxu1 %v931_v7 }
 0x352   :  { %772 = vmatmul.mubr.f32.vlgmr.msra.gmra.mrb[2].mxu1 %v933_v8 }
 0x425   :  { %v773_v10 = vpop.f32.mrb[2].mxu1 }
 0x426   :  { %v528_v11 = vadd.f32 %v773_v10, %v561_v9  ;;  %v522_v12 = vpop.f32.mrb[3].mxu1 }
 0x427   :  { %v523_v13 = vadd.f32 %v561_v9, %v522_v12 }
 0x428   :  { %532 = vst [vmem:[#allocation11 + $0x8] sm:$0xff] %v528_v11 }
 0x429   :  { %531 = vst [vmem:[#allocation11] sm:$0xff] %v523_v13 }
 0x42a   :  { %1055 = shalt.err (!%p1052_p2)
}
 0x42b   :  { %s1056_s8 = scalar_lea.hbm %s1257_s9, 256 }
 0x42c   :  { %p1057_p3 = scmp.ne.s32.totalorder %s1257_s9, %s1056_s8  ;;  %p1060_p4 = scmp.lt.u32.totalorder %s1056_s8, %s1257_s9 }
 0x42e   :  { %p1062_p5 = pnand %p1060_p4, %p1057_p3 }
 0x430   :  { %1065 = shalt.err (!%p1062_p5)
}
 0x431   :  { %544 = dma.vmem_to_hbm [thread:$0]  %s539_s13, 256, %s1257_s9, [#allocation4], %s1076_s21, %s1076_s21, %s1077_s22  }
 0x432   :  { %1072 = dma.done.wait [#allocation4], 256  }
 0x433   :  { %1073 = vsyncadd [#allocation4], 4294967040 }
 0x434   :  { %548 = vsyncpa [#allocation3], 1 }
 0x435   :  { %549 = vsyncpa [#allocation6], 1 }
 0x436   :  { %550 = vsyncpa [#allocation9], 1 }
 0x437   :  { %551 = vsyncpa [#allocation4], 1 }

</bundles_post_ra>
